<compile_context>
chip_gen: v7x
topology: tpu7x:2x2x1
jax: 0.10.0
libtpu: 0.0.40
codegen_flags: <defaults>
</compile_context>

<pallas_src>
import functools

import jax
import jax.numpy as jnp
from jax.experimental import pallas as pl
from jax.experimental.pallas import tpu as pltpu

IN_DIM = 784
HIDDEN = 512
LP = 128   # lane-padded latent width


def _round_up(x, m):
    return ((x + m - 1) // m) * m


def _choose_tb(batch):
    """Pick the batch tile: multiple of 8, <=512 rows, and an even tile count for
    large batches so the 'parallel' grid axis balances across v7x's two TensorCores."""
    bp8 = _round_up(max(batch, 1), 8)
    if bp8 < 64:
        # Tiny batch: one tile.  Splitting only adds per-step overhead on 1-TC chips.
        return bp8
    n = max(2, -(-bp8 // 512))     # >= 2 tiles, each <= ~512 rows
    n = n + (n % 2)                # even tile count (balanced megacore split)
    return _round_up(-(-bp8 // n), 8)


def _vae_encoder_kernel(x_ref, w1_ref, b1_ref, w23_ref, b23_ref, eps_ref,
                        z_ref, kl_ref, *, latent, batch, tb, lp):
    # linear1 + ReLU: bf16 operands, f32 MXU accumulation; bias/relu in f32 on the VPU.
    h = jnp.dot(x_ref[...], w1_ref[...], preferred_element_type=jnp.float32)
    h = jnp.maximum(h + b1_ref[...], 0.0)

    # Fused [mu | log_sigma] projection: one MXU pass over 2*lp lanes.
    mu_ls = jnp.dot(h.astype(w23_ref.dtype), w23_ref[...],
                    preferred_element_type=jnp.float32) + b23_ref[...]
    mu = mu_ls[:, :lp]
    log_sigma = mu_ls[:, lp:]

    # Reparameterization: a single EUP exp per element.
    sigma = jnp.exp(log_sigma)
    z_ref[...] = (mu + sigma * eps_ref[...]).astype(z_ref.dtype)

    # KL = sum(sigma^2 + mu^2 - log_sigma - 1/2) over valid lanes/rows.
    kl_terms = sigma * sigma + mu * mu - log_sigma - 0.5
    # Lane mask is load-bearing: padded log_sigma lanes give sigma=1 -> +0.5 each if unmasked.
    valid = jax.lax.broadcasted_iota(jnp.int32, (tb, lp), 1) < latent
    if batch % tb != 0:
        # Padded rows exist only when batch % tb != 0; emit the row mask only then (trace-time).
        i = pl.program_id(0)
        row = jax.lax.broadcasted_iota(jnp.int32, (tb, lp), 0) + i * tb
        valid = valid & (row < batch)
    kl_terms = jnp.where(valid, kl_terms, 0.0)
    # Sublane-group reduction with VPU adds only; lane-dense (8, lp) partial per tile.
    partial = jnp.sum(kl_terms.reshape(tb // 8, 8, lp), axis=0)
    kl_ref[...] = partial.reshape(1, 8, lp)


def prepare_params(params, mm_dtype=jnp.bfloat16):
    """One-time parameter prep (hoisted out of the per-call path): bf16 matmul weights and
    fused, lane-padded [mu | log_sigma] projection. Reuse the result across calls."""
    w1, b1, w2, b2, w3, b3 = params
    latent = w2.shape[1]
    assert latent <= LP, "latent dim must fit in one 128-lane group"

    w1p = jnp.asarray(w1, mm_dtype)                                   # (784, 512), K unpadded
    b1p = jnp.asarray(b1, jnp.float32).reshape(1, HIDDEN)

    w23 = jnp.zeros((HIDDEN, 2 * LP), mm_dtype)
    w23 = w23.at[:, :latent].set(jnp.asarray(w2, mm_dtype))
    w23 = w23.at[:, LP:LP + latent].set(jnp.asarray(w3, mm_dtype))
    b23 = jnp.zeros((1, 2 * LP), jnp.float32)
    b23 = b23.at[:, :latent].set(jnp.asarray(b2, jnp.float32).reshape(1, latent))
    b23 = b23.at[:, LP:LP + latent].set(jnp.asarray(b3, jnp.float32).reshape(1, latent))
    return (w1p, b1p, w23, b23)


def variational_encoder(x_nchw, prepared, eps, *, z_dtype=jnp.float32):
    """x_nchw: (B, 1, 28, 28) f32; eps: (B, latent) f32 ~ N(0,1).
    Returns (z: (B, latent) z_dtype, kl: scalar f32)."""
    w1p, b1p, w23, b23 = prepared
    B = x_nchw.shape[0]
    latent = eps.shape[1]
    assert latent <= LP

    x_flat = x_nchw.reshape(B, -1)                 # same as torch.flatten(x, start_dim=1)
    K = x_flat.shape[1]
    assert K == w1p.shape[0]
    mm_dtype = w1p.dtype

    TB = _choose_tb(B)
    Bp = _round_up(B, TB)
    num_tiles = Bp // TB

    # x: only cast (and row-pad when needed) -- no K padding (saves an extra HBM pass + traffic).
    if Bp == B:
        xp = x_flat.astype(mm_dtype)
    else:
        xp = jnp.zeros((Bp, K), mm_dtype).at[:B, :].set(x_flat.astype(mm_dtype))

    if (B, latent) == (Bp, LP):
        epsp = eps.astype(jnp.float32)
    else:
        epsp = jnp.zeros((Bp, LP), jnp.float32).at[:B, :latent].set(eps.astype(jnp.float32))

    kernel = functools.partial(_vae_encoder_kernel,
                               latent=latent, batch=B, tb=TB, lp=LP)

    z_pad, kl_parts = pl.pallas_call(
        kernel,
        out_shape=(
            jax.ShapeDtypeStruct((Bp, LP), z_dtype),
            jax.ShapeDtypeStruct((num_tiles, 8, LP), jnp.float32),
        ),
        grid_spec=pltpu.PrefetchScalarGridSpec(
            num_scalar_prefetch=0,
            grid=(num_tiles,),
            in_specs=[
                pl.BlockSpec((TB, K), lambda i: (i, 0)),            # x tile (pipelined, K=784 full)
                pl.BlockSpec((K, HIDDEN), lambda i: (0, 0)),        # w1 (VMEM-resident)
                pl.BlockSpec((1, HIDDEN), lambda i: (0, 0)),        # b1 (resident)
                pl.BlockSpec((HIDDEN, 2 * LP), lambda i: (0, 0)),   # w23 (resident)
                pl.BlockSpec((1, 2 * LP), lambda i: (0, 0)),        # b23 (resident)
                pl.BlockSpec((TB, LP), lambda i: (i, 0)),           # eps tile (pipelined)
            ],
            out_specs=(
                pl.BlockSpec((TB, LP), lambda i: (i, 0)),           # z tile, lane-dense
                pl.BlockSpec((1, 8, LP), lambda i: (i, 0, 0)),      # KL partials, lane-dense
            ),
        ),
        compiler_params=pltpu.CompilerParams(
            dimension_semantics=("parallel",),
            vmem_limit_bytes=32 * 1024 * 1024,   # headroom for large TB (v5e scoped default is 16 MiB)
        ),
    )(xp, w1p, b1p, w23, b23, epsp)

    kl = jnp.sum(kl_parts)
    # Note: for a bandwidth-bound pipeline the padded z (Bp, 128) can be consumed directly by the
    # decoder kernel to avoid materializing this slice.
    z = z_pad[:B, :latent]
    return z, kl


def init_params(key, latent_dims):
    """Deterministic synthetic parameters, torch-nn.Linear-style uniform init."""
    ks = jax.random.split(key, 6)

    def linear(kw, kb, fan_in, fan_out):
        bound = 1.0 / jnp.sqrt(fan_in)
        # stored as (in, out) == torch weight (out, in) transposed
        w = jax.random.uniform(kw, (fan_in, fan_out), jnp.float32, -bound, bound)
        b = jax.random.uniform(kb, (1, fan_out), jnp.float32, -bound, bound)
        return w, b

    w1, b1 = linear(ks[0], ks[1], IN_DIM, HIDDEN)
    w2, b2 = linear(ks[2], ks[3], HIDDEN, latent_dims)
    w3, b3 = linear(ks[4], ks[5], HIDDEN, latent_dims)
    return (w1, b1, w2, b2, w3, b3)


if __name__ == "__main__":
    latent_dims = 32
    B = 2

    key = jax.random.PRNGKey(0)
    k_x, k_p, k_eps = jax.random.split(key, 3)

    x = jax.random.normal(k_x, (B, 1, 28, 28), dtype=jnp.float32)        # NCHW -> 784
    params = init_params(k_p, latent_dims)
    prepared = prepare_params(params)                                    # hoisted, build once
    eps = jax.random.normal(k_eps, (B, latent_dims), dtype=jnp.float32)  # N(0,1) sample

    z, kl = variational_encoder(x, prepared, eps)
    jax.block_until_ready((z, kl))

    # Plain-JAX reference with identical bf16-matmul / f32-accumulate precision.
    w1, b1, w2, b2, w3, b3 = params
    bf = lambda a: a.astype(jnp.bfloat16)
    xf = x.reshape(B, -1)
    h_ref = jnp.maximum(
        jnp.dot(bf(xf), bf(w1), preferred_element_type=jnp.float32) + b1, 0.0)
    mu_ref = jnp.dot(bf(h_ref), bf(w2), preferred_element_type=jnp.float32) + b2
    ls_ref = jnp.dot(bf(h_ref), bf(w3), preferred_element_type=jnp.float32) + b3
    sigma_ref = jnp.exp(ls_ref)
    z_ref = mu_ref + sigma_ref * eps
    kl_ref = jnp.sum(sigma_ref ** 2 + mu_ref ** 2 - ls_ref - 0.5)

    assert jnp.allclose(z, z_ref, atol=2e-3, rtol=2e-3)
    assert jnp.allclose(kl, kl_ref, atol=5e-2, rtol=5e-3)

    print("KERNEL_OK")
</pallas_src>

<mosaic_0001>
module attributes {stable_mosaic.version = 11 : i64} {
  func.func @_vae_encoder_kernel(%arg0: i32, %arg1: memref<8x784xbf16, #tpu.memory_space<vmem>>, %arg2: memref<784x512xbf16, #tpu.memory_space<vmem>>, %arg3: memref<1x512xf32, #tpu.memory_space<vmem>>, %arg4: memref<512x256xbf16, #tpu.memory_space<vmem>>, %arg5: memref<1x256xf32, #tpu.memory_space<vmem>>, %arg6: memref<8x128xf32, #tpu.memory_space<vmem>>, %arg7: memref<8x128xf32, #tpu.memory_space<vmem>>, %arg8: memref<1x8x128xf32, #tpu.memory_space<vmem>>) attributes {dimension_semantics = [#tpu.dimension_semantics<parallel>], iteration_bounds = array<i64: 1>, scalar_prefetch = 0 : i64, scratch_operands = 0 : i64, tpu.core_type = #tpu.core_type<tc>, window_params = [{transform_indices = @transform_0, window_bounds = array<i64: 8, 784>}, {pipeline_mode = #tpu.pipeline_mode<synchronous>, transform_indices = @transform_1, window_bounds = array<i64: 784, 512>}, {pipeline_mode = #tpu.pipeline_mode<synchronous>, transform_indices = @transform_2, window_bounds = array<i64: 1, 512>}, {pipeline_mode = #tpu.pipeline_mode<synchronous>, transform_indices = @transform_3, window_bounds = array<i64: 512, 256>}, {pipeline_mode = #tpu.pipeline_mode<synchronous>, transform_indices = @transform_4, window_bounds = array<i64: 1, 256>}, {transform_indices = @transform_5, window_bounds = array<i64: 8, 128>}, {transform_indices = @transform_6, window_bounds = array<i64: 8, 128>}, {transform_indices = @transform_7, window_bounds = array<i64: 1, 8, 128>}]} {
    %c0 = arith.constant 0 : index
    %c0_0 = arith.constant 0 : index
    %0 = vector.load %arg1[%c0, %c0_0] : memref<8x784xbf16, #tpu.memory_space<vmem>>, vector<8x784xbf16>
    %c0_1 = arith.constant 0 : index
    %c0_2 = arith.constant 0 : index
    %1 = vector.load %arg2[%c0_1, %c0_2] : memref<784x512xbf16, #tpu.memory_space<vmem>>, vector<784x512xbf16>
    %cst = arith.constant dense<0.000000e+00> : vector<8x512xf32>
    %2 = tpu.matmul %0, %1, %cst {dimension_numbers = #tpu.dot_dimension_numbers<[1], [0], [0], [1], [0, 0, 1, 1], [], []>} : vector<8x784xbf16>, vector<784x512xbf16>, vector<8x512xf32> -> vector<8x512xf32>
    %c0_3 = arith.constant 0 : index
    %c0_4 = arith.constant 0 : index
    %3 = vector.load %arg3[%c0_3, %c0_4] : memref<1x512xf32, #tpu.memory_space<vmem>>, vector<1x512xf32>
    %4 = vector.broadcast %3 : vector<1x512xf32> to vector<8x512xf32>
    %5 = arith.addf %2, %4 : vector<8x512xf32>
    %cst_5 = arith.constant 0.000000e+00 : f32
    %6 = vector.broadcast %cst_5 : f32 to vector<8x512xf32>
    %7 = arith.maximumf %5, %6 : vector<8x512xf32>
    %8 = arith.truncf %7 : vector<8x512xf32> to vector<8x512xbf16>
    %c0_6 = arith.constant 0 : index
    %c0_7 = arith.constant 0 : index
    %9 = vector.load %arg4[%c0_6, %c0_7] : memref<512x256xbf16, #tpu.memory_space<vmem>>, vector<512x256xbf16>
    %cst_8 = arith.constant dense<0.000000e+00> : vector<8x256xf32>
    %10 = tpu.matmul %8, %9, %cst_8 {dimension_numbers = #tpu.dot_dimension_numbers<[1], [0], [0], [1], [0, 0, 1, 1], [], []>} : vector<8x512xbf16>, vector<512x256xbf16>, vector<8x256xf32> -> vector<8x256xf32>
    %c0_9 = arith.constant 0 : index
    %c0_10 = arith.constant 0 : index
    %11 = vector.load %arg5[%c0_9, %c0_10] : memref<1x256xf32, #tpu.memory_space<vmem>>, vector<1x256xf32>
    %12 = vector.broadcast %11 : vector<1x256xf32> to vector<8x256xf32>
    %13 = arith.addf %10, %12 : vector<8x256xf32>
    %14 = vector.extract_strided_slice %13 {offsets = [0, 0], sizes = [8, 128], strides = [1, 1]} : vector<8x256xf32> to vector<8x128xf32>
    %15 = vector.extract_strided_slice %13 {offsets = [0, 128], sizes = [8, 128], strides = [1, 1]} : vector<8x256xf32> to vector<8x128xf32>
    %16 = math.exp %15 : vector<8x128xf32>
    %c0_11 = arith.constant 0 : index
    %c0_12 = arith.constant 0 : index
    %17 = vector.load %arg6[%c0_11, %c0_12] : memref<8x128xf32, #tpu.memory_space<vmem>>, vector<8x128xf32>
    %18 = arith.mulf %16, %17 : vector<8x128xf32>
    %19 = arith.addf %14, %18 : vector<8x128xf32>
    %c0_13 = arith.constant 0 : index
    %c0_14 = arith.constant 0 : index
    %20 = vector.load %arg7[%c0_13, %c0_14] : memref<8x128xf32, #tpu.memory_space<vmem>>, vector<8x128xf32>
    tpu.vector_store %arg7[%c0_13, %c0_14], %19 {strides = array<i32>} : memref<8x128xf32, #tpu.memory_space<vmem>>, vector<8x128xf32>,
    %21 = arith.mulf %16, %16 : vector<8x128xf32>
    %22 = arith.mulf %14, %14 : vector<8x128xf32>
    %23 = arith.addf %21, %22 : vector<8x128xf32>
    %24 = arith.subf %23, %15 : vector<8x128xf32>
    %cst_15 = arith.constant 5.000000e-01 : f32
    %25 = vector.broadcast %cst_15 : f32 to vector<8x128xf32>
    %26 = arith.subf %24, %25 : vector<8x128xf32>
    %27 = tpu.iota {dimensions = array<i32: 1>} : vector<8x128xi32>
    %c32_i32 = arith.constant 32 : i32
    %28 = vector.broadcast %c32_i32 : i32 to vector<8x128xi32>
    %29 = arith.cmpi slt, %27, %28 : vector<8x128xi32>
    %30 = tpu.iota {dimensions = array<i32: 0>} : vector<8x128xi32>
    %c8_i32 = arith.constant 8 : i32
    %31 = arith.muli %arg0, %c8_i32 : i32
    %32 = vector.broadcast %31 : i32 to vector<8x128xi32>
    %33 = arith.addi %30, %32 : vector<8x128xi32>
    %c2_i32 = arith.constant 2 : i32
    %34 = vector.broadcast %c2_i32 : i32 to vector<8x128xi32>
    %35 = arith.cmpi slt, %33, %34 : vector<8x128xi32>
    %36 = arith.andi %29, %35 : vector<8x128xi1>
    %cst_16 = arith.constant 0.000000e+00 : f32
    %37 = vector.broadcast %cst_16 : f32 to vector<8x128xf32>
    %38 = arith.select %36, %26, %37 : vector<8x128xi1>, vector<8x128xf32>
    %39 = vector.shape_cast %38 : vector<8x128xf32> to vector<1x8x128xf32>
    %cst_17 = arith.constant dense<0.000000e+00> : vector<8x128xf32>
    %40 = vector.multi_reduction <add>, %39, %cst_17 [0] : vector<1x8x128xf32> to vector<8x128xf32>
    %41 = vector.shape_cast %40 : vector<8x128xf32> to vector<1x8x128xf32>
    %c0_18 = arith.constant 0 : index
    %c0_19 = arith.constant 0 : index
    %c0_20 = arith.constant 0 : index
    %42 = vector.load %arg8[%c0_18, %c0_19, %c0_20] : memref<1x8x128xf32, #tpu.memory_space<vmem>>, vector<1x8x128xf32>
    tpu.vector_store %arg8[%c0_18, %c0_19, %c0_20], %41 {strides = array<i32>} : memref<1x8x128xf32, #tpu.memory_space<vmem>>, vector<1x8x128xf32>,
    return
  }
  func.func @transform_0(%arg0: i32) -> (i32, i32) {
    %c0_i32 = arith.constant 0 : i32
    %c0_i32_0 = arith.constant 0 : i32
    return %arg0, %c0_i32 : i32, i32
  }
  func.func @transform_1(%arg0: i32) -> (i32, i32) {
    %c0_i32 = arith.constant 0 : i32
    %c0_i32_0 = arith.constant 0 : i32
    %c0_i32_1 = arith.constant 0 : i32
    return %c0_i32, %c0_i32_0 : i32, i32
  }
  func.func @transform_2(%arg0: i32) -> (i32, i32) {
    %c0_i32 = arith.constant 0 : i32
    %c0_i32_0 = arith.constant 0 : i32
    %c0_i32_1 = arith.constant 0 : i32
    return %c0_i32, %c0_i32_0 : i32, i32
  }
  func.func @transform_3(%arg0: i32) -> (i32, i32) {
    %c0_i32 = arith.constant 0 : i32
    %c0_i32_0 = arith.constant 0 : i32
    %c0_i32_1 = arith.constant 0 : i32
    return %c0_i32, %c0_i32_0 : i32, i32
  }
  func.func @transform_4(%arg0: i32) -> (i32, i32) {
    %c0_i32 = arith.constant 0 : i32
    %c0_i32_0 = arith.constant 0 : i32
    %c0_i32_1 = arith.constant 0 : i32
    return %c0_i32, %c0_i32_0 : i32, i32
  }
  func.func @transform_5(%arg0: i32) -> (i32, i32) {
    %c0_i32 = arith.constant 0 : i32
    %c0_i32_0 = arith.constant 0 : i32
    return %arg0, %c0_i32 : i32, i32
  }
  func.func @transform_6(%arg0: i32) -> (i32, i32) {
    %c0_i32 = arith.constant 0 : i32
    %c0_i32_0 = arith.constant 0 : i32
    return %arg0, %c0_i32 : i32, i32
  }
  func.func @transform_7(%arg0: i32) -> (i32, i32, i32) {
    %c0_i32 = arith.constant 0 : i32
    %c0_i32_0 = arith.constant 0 : i32
    %c0_i32_1 = arith.constant 0 : i32
    return %arg0, %c0_i32, %c0_i32_0 : i32, i32, i32
  }
}

</mosaic_0001>

<bundles_post_ra>
// kernel: tpu_custom_call.1
= control target key start
LH: loop header
LB: loop body
LE: loop exit
PB: predicated region body
PF: predicated region fallthrough
CT: control target
= control target key end

     0   :  { %13 = vsyncpa [#allocation3], 0  ;;  %s3177_s0 = inlined_call_operand.hbm [shape: bf16[8,784], index: 0, kind: input, shape index: {}]   ;;  %s3178_s1 = inlined_call_operand.hbm [shape: bf16[784,512], index: 1, kind: input, shape index: {}]   ;;  %s3179_s2 = inlined_call_operand.vmem [shape: f32[1,512], index: 2, kind: input, shape index: {}]   ;;  %s3180_s3 = inlined_call_operand.hbm [shape: bf16[512,256], index: 3, kind: input, shape index: {}]   ;;  %s3181_s4 = inlined_call_operand.vmem [shape: f32[1,256], index: 4, kind: input, shape index: {}]   ;;  %s3182_s5 = inlined_call_operand.vmem [shape: f32[8,128], index: 5, kind: input, shape index: {}]   ;;  %s3183_s6 = inlined_call_operand.hbm [shape: f32[8,128], index: 6, kind: output, shape index: {0}]   ;;  %s3184_s7 = inlined_call_operand.hbm [shape: f32[1,8,128], index: 7, kind: output, shape index: {1}]  }
   0x1   :  { %14 = vsyncpa [#allocation6], 0 }
   0x2   :  { %15 = vsyncpa [#allocation4], 0 }
   0x3   :  { %16 = vsyncpa [#allocation10], 0  ;;  %s2994_s24 = smov [#allocation5]   ;;  %s2876_s28 = scalar_lea.hbm %s3178_s1, 25088 }
   0x4   :  { %s32_s25 = sshll.u32 %s2994_s24, 4  ;;  %p2877_p0 = scmp.ne.s32.totalorder %s3178_s1, %s2876_s28  ;;  %s33_s25 = int_to_ptr.vmem [resolvable:$true] %s32_s25 }
   0x5   :  { %p2880_p1 = scmp.lt.u32.totalorder %s2876_s28, %s3178_s1 }
   0x7   :  { %p2882_p2 = pnand %p2880_p1, %p2877_p0 }
   0x9   :  { %2885 = shalt.err (!%p2882_p2)
}
   0xa   :  { %s2886_s10 = scalar_lea.vmem %s33_s25, 25088  ;;  %p2891_p4 = scmp.lt.s32.totalorder %s33_s25, %s33_s25 }
   0xb   :  { %p2887_p3 = scmp.ne.s32.totalorder %s33_s25, %s2886_s10  ;;  %p2892_p5 = scmp.lt.s32.totalorder %s2886_s10, %s2886_s10 }
   0xd   :  { %p2893_p6 = por %p2892_p5, %p2891_p4 }
   0xf   :  { %p2894_p7 = pnand %p2893_p6, %p2887_p3 }
  0x11   :  { %2897 = shalt.err (!%p2894_p7)
}
  0x12   :  { %s2995_s11 = smov 256   ;;  %s2996_s12 = smov 16  }
  0x13   :  { %38 = dma.hbm_to_vmem [thread:$0]  %s3178_s1, 25088, %s33_s25, [#allocation6], %s2995_s11, %s2995_s11, %s2996_s12  }
  0x14   :  { %s2997_s15 = smov [#allocation2]   ;;  %s2998_s17 = smov [#allocation7]  }
  0x15   :  { %s23_s16 = sshll.u32 %s2997_s15, 4  ;;  %s46_s18 = sshll.u32 %s2998_s17, 4  ;;  %s24_s16 = int_to_ptr.vmem [resolvable:$true] %s23_s16  ;;  %s47_s18 = int_to_ptr.vmem [resolvable:$true] %s46_s18 }
  0x16   :  { %s2898_s21 = scalar_lea.hbm %s3177_s0, 448 }
  0x17   :  { %p2899_p8 = scmp.ne.s32.totalorder %s3177_s0, %s2898_s21  ;;  %p2902_p9 = scmp.lt.u32.totalorder %s2898_s21, %s3177_s0 }
  0x19   :  { %p2904_p10 = pnand %p2902_p9, %p2899_p8 }
  0x1b   :  { %2907 = shalt.err (!%p2904_p10)
}
  0x1c   :  { %s2908_s1 = scalar_lea.vmem %s24_s16, 448  ;;  %p2913_p12 = scmp.lt.s32.totalorder %s24_s16, %s24_s16 }
  0x1d   :  { %p2909_p11 = scmp.ne.s32.totalorder %s24_s16, %s2908_s1  ;;  %p2914_p13 = scmp.lt.s32.totalorder %s2908_s1, %s2908_s1 }
  0x1f   :  { %p2915_p0 = por %p2914_p13, %p2913_p12 }
  0x21   :  { %p2916_p1 = pnand %p2915_p0, %p2909_p11 }
  0x23   :  { %2919 = shalt.err (!%p2916_p1)
}
  0x24   :  { %26 = dma.hbm_to_vmem [thread:$0]  %s3177_s0, 448, %s24_s16, [#allocation3]  }
  0x25   :  { %s2920_s30 = scalar_lea.hbm %s3180_s3, 8192 }
  0x26   :  { %p2921_p2 = scmp.ne.s32.totalorder %s3180_s3, %s2920_s30  ;;  %p2924_p3 = scmp.lt.u32.totalorder %s2920_s30, %s3180_s3 }
  0x28   :  { %p2926_p4 = pnand %p2924_p3, %p2921_p2 }
  0x2a   :  { %2929 = shalt.err (!%p2926_p4)
}
  0x2b   :  { %s2930_s12 = scalar_lea.vmem %s47_s18, 8192  ;;  %p2935_p6 = scmp.lt.s32.totalorder %s47_s18, %s47_s18 }
  0x2c   :  { %p2931_p5 = scmp.ne.s32.totalorder %s47_s18, %s2930_s12  ;;  %p2936_p7 = scmp.lt.s32.totalorder %s2930_s12, %s2930_s12 }
  0x2e   :  { %p2937_p8 = por %p2936_p7, %p2935_p6 }
  0x30   :  { %p2938_p9 = pnand %p2937_p8, %p2931_p5 }
  0x32   :  { %2941 = shalt.err (!%p2938_p9)
}
  0x33   :  { %s2999_s0 = smov 128   ;;  %s3000_s13 = smov 8  }
  0x34   :  { %52 = dma.hbm_to_vmem [thread:$0]  %s3180_s3, 8192, %s47_s18, [#allocation6], %s2999_s0, %s2999_s0, %s3000_s13  }
  0x35   :  { %2986 = dma.done.wait [#allocation3], 448  }
  0x36   :  { %2987 = vsyncadd [#allocation3], 4294966848 }
  0x37   :  { %2988 = dma.done.wait [#allocation6], 33280  }
  0x38   :  { %2989 = vsyncadd [#allocation6], 4294934016  ;;  %v2477_v0 = vld [vmem:[#allocation5 + $0x4] ss:$16 sps:$4 sm:$0xff]   ;;  %v2481_v2 = vld [vmem:[#allocation5] ss:$16 sps:$4 sm:$0xff]  }
  0x39   :  { %v2479_v1 = vld [vmem:[#allocation5 + $0x204] ss:$16 sps:$4 sm:$0xff]   ;;  %1297 = vmatprep.subr.bf16.mxu1 %v2477_v0  ;;  %v2482_v3 = vld [vmem:[#allocation5 + $0x200] ss:$16 sps:$4 sm:$0xff]   ;;  %vm1293_vm0 = vcmask 130048   ;;  %s3003_s21 = smov [#allocation9]  }
  0x3a   :  { %1338 = vmatprep.subr.bf16.mxu0 %v2479_v1  ;;  %v2483_v4 = vld [vmem:[#allocation5 + $0x24] ss:$16 sps:$4 sm:$0xff]   ;;  %1298 = vmatpush1.bf16.msra.mxu1 %v2481_v2  ;;  %v2487_v6 = vld [vmem:[#allocation5 + $0x20] ss:$16 sps:$4 sm:$0xff]   ;;  %s2151_s22 = sshll.u32 %s3003_s21, 4  ;;  %s2152_s22 = int_to_ptr.vmem [resolvable:$true] %s2151_s22 }
  0x3b   :  { %1339 = vmatpush1.bf16.msra.mxu0 %v2482_v3  ;;  %v2485_v5 = vld [vmem:[#allocation5 + $0x224] ss:$16 sps:$4 sm:$0xff]   ;;  %1299 = vmatprep.subr.bf16.mxu1 %v2483_v4  ;;  %v2488_v7 = vld [vmem:[#allocation5 + $0x220] ss:$16 sps:$4 sm:$0xff]  }
  0x3c   :  { %1340 = vmatprep.subr.bf16.mxu0 %v2485_v5  ;;  %v2489_v8 = vld [vmem:[#allocation5 + $0x44] ss:$16 sps:$4 sm:$0xff]   ;;  %v2493_v10 = vld [vmem:[#allocation5 + $0x40] ss:$16 sps:$4 sm:$0xff]   ;;  %v2582_v5 = vld [vmem:[#allocation5 + $0xc] ss:$16 sps:$4 sm:$0xff]  }
  0x3d   :  { %v2491_v9 = vld [vmem:[#allocation5 + $0x244] ss:$16 sps:$4 sm:$0xff]   ;;  %v2494_v11 = vld [vmem:[#allocation5 + $0x240] ss:$16 sps:$4 sm:$0xff]  }
  0x3e   :  { %1300 = vmatpush1.bf16.msra.mxu1 %v2487_v6  ;;  %v2495_v12 = vld [vmem:[#allocation5 + $0x64] ss:$16 sps:$4 sm:$0xff]   ;;  %v2499_v14 = vld [vmem:[#allocation5 + $0x60] ss:$16 sps:$4 sm:$0xff]  }
  0x3f   :  { %1341 = vmatpush1.bf16.msra.mxu0 %v2488_v7  ;;  %1301 = vmatprep.subr.bf16.mxu1 %v2489_v8  ;;  %v2497_v13 = vld [vmem:[#allocation5 + $0x264] ss:$16 sps:$4 sm:$0xff]   ;;  %v2500_v15 = vld [vmem:[#allocation5 + $0x260] ss:$16 sps:$4 sm:$0xff]  }
  0x40   :  { %1342 = vmatprep.subr.bf16.mxu0 %v2491_v9  ;;  %v2501_v16 = vld [vmem:[#allocation5 + $0x84] ss:$16 sps:$4 sm:$0xff]   ;;  %v2505_v18 = vld [vmem:[#allocation5 + $0x80] ss:$16 sps:$4 sm:$0xff]   ;;  %v2580_v9 = vld [vmem:[#allocation5 + $0x8] ss:$16 sps:$4 sm:$0xff]  }
  0x41   :  { %v2503_v17 = vld [vmem:[#allocation5 + $0x284] ss:$16 sps:$4 sm:$0xff]   ;;  %v2506_v19 = vld [vmem:[#allocation5 + $0x280] ss:$16 sps:$4 sm:$0xff]  }
  0x42   :  { %1302 = vmatpush1.bf16.msra.mxu1 %v2493_v10  ;;  %v2507_v20 = vld [vmem:[#allocation5 + $0xa4] ss:$16 sps:$4 sm:$0xff]   ;;  %v2511_v22 = vld [vmem:[#allocation5 + $0xa0] ss:$16 sps:$4 sm:$0xff]  }
  0x43   :  { %1343 = vmatpush1.bf16.msra.mxu0 %v2494_v11  ;;  %1303 = vmatprep.subr.bf16.mxu1 %v2495_v12  ;;  %v2509_v21 = vld [vmem:[#allocation5 + $0x2a4] ss:$16 sps:$4 sm:$0xff]   ;;  %v2512_v23 = vld [vmem:[#allocation5 + $0x2a0] ss:$16 sps:$4 sm:$0xff]   ;;  %v2588_v11 = vld [vmem:[#allocation5 + $0x2c] ss:$16 sps:$4 sm:$0xff]  }
  0x44   :  { %1344 = vmatprep.subr.bf16.mxu0 %v2497_v13  ;;  %v2513_v24 = vld [vmem:[#allocation5 + $0xc4] ss:$16 sps:$4 sm:$0xff]   ;;  %v2517_v26 = vld [vmem:[#allocation5 + $0xc0] ss:$16 sps:$4 sm:$0xff]   ;;  %v2586_v13 = vld [vmem:[#allocation5 + $0x28] ss:$16 sps:$4 sm:$0xff]  }
  0x45   :  { %v2515_v25 = vld [vmem:[#allocation5 + $0x2c4] ss:$16 sps:$4 sm:$0xff]   ;;  %v2518_v27 = vld [vmem:[#allocation5 + $0x2c0] ss:$16 sps:$4 sm:$0xff]  }
  0x46   :  { %1304 = vmatpush1.bf16.msra.mxu1 %v2499_v14  ;;  %v2519_v28 = vld [vmem:[#allocation5 + $0xe4] ss:$16 sps:$4 sm:$0xff]   ;;  %v2523_v30 = vld [vmem:[#allocation5 + $0xe0] ss:$16 sps:$4 sm:$0xff]  }
  0x47   :  { %1345 = vmatpush1.bf16.msra.mxu0 %v2500_v15  ;;  %1305 = vmatprep.subr.bf16.mxu1 %v2501_v16  ;;  %v2521_v29 = vld [vmem:[#allocation5 + $0x2e4] ss:$16 sps:$4 sm:$0xff]   ;;  %v2524_v31 = vld [vmem:[#allocation5 + $0x2e0] ss:$16 sps:$4 sm:$0xff]   ;;  %v2594_v15 = vld [vmem:[#allocation5 + $0x4c] ss:$16 sps:$4 sm:$0xff]  }
  0x48   :  { %1346 = vmatprep.subr.bf16.mxu0 %v2503_v17  ;;  %v2525_v32 = vld [vmem:[#allocation5 + $0x104] ss:$16 sps:$4 sm:$0xff]   ;;  %v2529_v34 = vld [vmem:[#allocation5 + $0x100] ss:$16 sps:$4 sm:$0xff]   ;;  %v2592_v17 = vld [vmem:[#allocation5 + $0x48] ss:$16 sps:$4 sm:$0xff]  }
  0x49   :  { %v2527_v33 = vld [vmem:[#allocation5 + $0x304] ss:$16 sps:$4 sm:$0xff]   ;;  %v2530_v35 = vld [vmem:[#allocation5 + $0x300] ss:$16 sps:$4 sm:$0xff]  }
  0x4a   :  { %1306 = vmatpush1.bf16.msra.mxu1 %v2505_v18  ;;  %v2531_v36 = vld [vmem:[#allocation5 + $0x124] ss:$16 sps:$4 sm:$0xff]   ;;  %v2535_v38 = vld [vmem:[#allocation5 + $0x120] ss:$16 sps:$4 sm:$0xff]  }
  0x4b   :  { %1347 = vmatpush1.bf16.msra.mxu0 %v2506_v19  ;;  %1307 = vmatprep.subr.bf16.mxu1 %v2507_v20  ;;  %v2533_v37 = vld [vmem:[#allocation5 + $0x324] ss:$16 sps:$4 sm:$0xff]   ;;  %v2536_v39 = vld [vmem:[#allocation5 + $0x320] ss:$16 sps:$4 sm:$0xff]   ;;  %v2600_v19 = vld [vmem:[#allocation5 + $0x6c] ss:$16 sps:$4 sm:$0xff]  }
  0x4c   :  { %1348 = vmatprep.subr.bf16.mxu0 %v2509_v21  ;;  %v2537_v40 = vld [vmem:[#allocation5 + $0x144] ss:$16 sps:$4 sm:$0xff]   ;;  %v2541_v42 = vld [vmem:[#allocation5 + $0x140] ss:$16 sps:$4 sm:$0xff]   ;;  %v2598_v21 = vld [vmem:[#allocation5 + $0x68] ss:$16 sps:$4 sm:$0xff]  }
  0x4d   :  { %v2539_v41 = vld [vmem:[#allocation5 + $0x344] ss:$16 sps:$4 sm:$0xff]   ;;  %v2542_v43 = vld [vmem:[#allocation5 + $0x340] ss:$16 sps:$4 sm:$0xff]  }
  0x4e   :  { %1308 = vmatpush1.bf16.msra.mxu1 %v2511_v22  ;;  %v2543_v44 = vld [vmem:[#allocation5 + $0x164] ss:$16 sps:$4 sm:$0xff]   ;;  %v68_v48 = vld [vmem:[#allocation2 + $0x8] sm:$0xff] }
  0x4f   :  { %1349 = vmatpush1.bf16.msra.mxu0 %v2512_v23  ;;  %1309 = vmatprep.subr.bf16.mxu1 %v2513_v24  ;;  %v2545_v45 = vld [vmem:[#allocation5 + $0x364] ss:$16 sps:$4 sm:$0xff]   ;;  %v2547_v49 = vld [vmem:[#allocation5 + $0x160] ss:$16 sps:$4 sm:$0xff]   ;;  %v3082_v51 = vcombine.high %v68_v48, %v68_v48  ;;  %v3088_v7 = vcombine.low %v68_v48, %v68_v48  ;;  %v2606_v23 = vld [vmem:[#allocation5 + $0x8c] ss:$16 sps:$4 sm:$0xff]  }
  0x50   :  { %1350 = vmatprep.subr.bf16.mxu0 %v2515_v25  ;;  %v67_v46 = vld [vmem:[#allocation2] sm:$0xff]  ;;  %v2548_v50 = vld [vmem:[#allocation5 + $0x360] ss:$16 sps:$4 sm:$0xff]  }
  0x51   :  { %v3080_v47 = vcombine.high %v67_v46, %v67_v46  ;;  %v2549_v52 = vld [vmem:[#allocation5 + $0x184] ss:$16 sps:$4 sm:$0xff]   ;;  %1370 = vmatprep.mubr.bf16.mxu0 %v3082_v51  ;;  %v2553_v54 = vld [vmem:[#allocation5 + $0x180] ss:$16 sps:$4 sm:$0xff]   ;;  %v3086_v6 = vcombine.low %v67_v46, %v67_v46  ;;  %v2604_v25 = vld [vmem:[#allocation5 + $0x88] ss:$16 sps:$4 sm:$0xff]  }
  0x52   :  { %1310 = vmatpush1.bf16.msra.mxu1 %v2517_v26  ;;  %v2551_v53 = vld [vmem:[#allocation5 + $0x384] ss:$16 sps:$4 sm:$0xff]   ;;  %v2554_v55 = vld [vmem:[#allocation5 + $0x380] ss:$16 sps:$4 sm:$0xff]  }
  0x53   :  { %1351 = vmatpush1.bf16.msra.mxu0 %v2518_v27  ;;  %1311 = vmatprep.subr.bf16.mxu1 %v2519_v28  ;;  %v2555_v56 = vld [vmem:[#allocation5 + $0x1a4] ss:$16 sps:$4 sm:$0xff]   ;;  %v2559_v58 = vld [vmem:[#allocation5 + $0x1a0] ss:$16 sps:$4 sm:$0xff]   ;;  %v2612_v27 = vld [vmem:[#allocation5 + $0xac] ss:$16 sps:$4 sm:$0xff]  }
  0x54   :  { %1352 = vmatprep.subr.bf16.mxu0 %v2521_v29  ;;  %1329 = vmatprep.mubr.bf16.mxu1 %v3080_v47  ;;  %v2557_v57 = vld [vmem:[#allocation5 + $0x3a4] ss:$16 sps:$4 sm:$0xff]   ;;  %v2560_v59 = vld [vmem:[#allocation5 + $0x3a0] ss:$16 sps:$4 sm:$0xff]   ;;  %v2610_v29 = vld [vmem:[#allocation5 + $0xa8] ss:$16 sps:$4 sm:$0xff]  }
  0x55   :  { %v2561_v60 = vld [vmem:[#allocation5 + $0x1c4] ss:$16 sps:$4 sm:$0xff]   ;;  %v2565_v62 = vld [vmem:[#allocation5 + $0x1c0] ss:$16 sps:$4 sm:$0xff]  }
  0x56   :  { %1312 = vmatpush1.bf16.msra.mxu1 %v2523_v30  ;;  %v2563_v61 = vld [vmem:[#allocation5 + $0x3c4] ss:$16 sps:$4 sm:$0xff]   ;;  %v2566_v63 = vld [vmem:[#allocation5 + $0x3c0] ss:$16 sps:$4 sm:$0xff]  }
  0x57   :  { %1353 = vmatpush1.bf16.msra.mxu0 %v2524_v31  ;;  %1313 = vmatprep.subr.bf16.mxu1 %v2525_v32  ;;  %v2567_v0 = vld [vmem:[#allocation5 + $0x1e4] ss:$16 sps:$4 sm:$0xff]   ;;  %v2571_v2 = vld [vmem:[#allocation5 + $0x1e0] ss:$16 sps:$4 sm:$0xff]   ;;  %v2618_v31 = vld [vmem:[#allocation5 + $0xcc] ss:$16 sps:$4 sm:$0xff]  }
  0x58   :  { %1354 = vmatprep.subr.bf16.mxu0 %v2527_v33  ;;  %v2569_v1 = vld [vmem:[#allocation5 + $0x3e4] ss:$16 sps:$4 sm:$0xff]   ;;  %v2572_v3 = vld [vmem:[#allocation5 + $0x3e0] ss:$16 sps:$4 sm:$0xff]  }
  0x59   :  { %v2579_v4 = vld [vmem:[#allocation5 + $0x404] ss:$16 sps:$4 sm:$0xff]   ;;  %v2577_v8 = vld [vmem:[#allocation5 + $0x400] ss:$16 sps:$4 sm:$0xff]  }
  0x5a   :  { %1314 = vmatpush1.bf16.msra.mxu1 %v2529_v34  ;;  %v2585_v10 = vld [vmem:[#allocation5 + $0x424] ss:$16 sps:$4 sm:$0xff]   ;;  %v2583_v12 = vld [vmem:[#allocation5 + $0x420] ss:$16 sps:$4 sm:$0xff]  }
  0x5b   :  { %1355 = vmatpush1.bf16.msra.mxu0 %v2530_v35  ;;  %1315 = vmatprep.subr.bf16.mxu1 %v2531_v36  ;;  %v2591_v14 = vld [vmem:[#allocation5 + $0x444] ss:$16 sps:$4 sm:$0xff]   ;;  %v2589_v16 = vld [vmem:[#allocation5 + $0x440] ss:$16 sps:$4 sm:$0xff]   ;;  %v2616_v35 = vld [vmem:[#allocation5 + $0xc8] ss:$16 sps:$4 sm:$0xff]  }
  0x5c   :  { %1356 = vmatprep.subr.bf16.mxu0 %v2533_v37  ;;  %v2597_v18 = vld [vmem:[#allocation5 + $0x464] ss:$16 sps:$4 sm:$0xff]   ;;  %v2595_v20 = vld [vmem:[#allocation5 + $0x460] ss:$16 sps:$4 sm:$0xff]   ;;  %v2624_v37 = vld [vmem:[#allocation5 + $0xec] ss:$16 sps:$4 sm:$0xff]  }
  0x5d   :  { %v2603_v22 = vld [vmem:[#allocation5 + $0x484] ss:$16 sps:$4 sm:$0xff]   ;;  %v2601_v24 = vld [vmem:[#allocation5 + $0x480] ss:$16 sps:$4 sm:$0xff]  }
  0x5e   :  { %1316 = vmatpush1.bf16.msra.mxu1 %v2535_v38  ;;  %v2609_v26 = vld [vmem:[#allocation5 + $0x4a4] ss:$16 sps:$4 sm:$0xff]   ;;  %v2607_v28 = vld [vmem:[#allocation5 + $0x4a0] ss:$16 sps:$4 sm:$0xff]  }
  0x5f   :  { %1357 = vmatpush1.bf16.msra.mxu0 %v2536_v39  ;;  %1317 = vmatprep.subr.bf16.mxu1 %v2537_v40  ;;  %v2615_v30 = vld [vmem:[#allocation5 + $0x4c4] ss:$16 sps:$4 sm:$0xff]   ;;  %v2613_v33 = vld [vmem:[#allocation5 + $0x4c0] ss:$16 sps:$4 sm:$0xff]   ;;  %v2622_v39 = vld [vmem:[#allocation5 + $0xe8] ss:$16 sps:$4 sm:$0xff]  }
  0x60   :  { %1358 = vmatprep.subr.bf16.mxu0 %v2539_v41  ;;  %v3093_v32 = vld [vmem:[#allocation2 + $0x10] sm:$0xff]  ;;  %v2619_v38 = vld [vmem:[#allocation5 + $0x4e0] ss:$16 sps:$4 sm:$0xff]   ;;  %v2630_v41 = vld [vmem:[#allocation5 + $0x10c] ss:$16 sps:$4 sm:$0xff]  }
  0x61   :  { %v3097_v34 = vcombine.high %v3093_v32, %v3093_v32  ;;  %v2621_v36 = vld [vmem:[#allocation5 + $0x4e4] ss:$16 sps:$4 sm:$0xff]   ;;  %v2631_v46 = vld [vmem:[#allocation5 + $0x520] ss:$16 sps:$4 sm:$0xff]  }
  0x62   :  { %1318 = vmatpush1.bf16.msra.mxu1 %v2541_v42  ;;  %v2627_v40 = vld [vmem:[#allocation5 + $0x504] ss:$16 sps:$4 sm:$0xff]   ;;  %v2625_v42 = vld [vmem:[#allocation5 + $0x500] ss:$16 sps:$4 sm:$0xff]  }
  0x63   :  { %1359 = vmatpush1.bf16.msra.mxu0 %v2542_v43  ;;  %1319 = vmatprep.subr.bf16.mxu1 %v2543_v44  ;;  %v2628_v43 = vld [vmem:[#allocation5 + $0x108] ss:$16 sps:$4 sm:$0xff]   ;;  %v2633_v44 = vld [vmem:[#allocation5 + $0x524] ss:$16 sps:$4 sm:$0xff]  }
  0x64   :  { %1360 = vmatprep.subr.bf16.mxu0 %v2545_v45  ;;  %v2636_v45 = vld [vmem:[#allocation5 + $0x12c] ss:$16 sps:$4 sm:$0xff]   ;;  %v2639_v48 = vld [vmem:[#allocation5 + $0x544] ss:$16 sps:$4 sm:$0xff]  }
  0x66   :  { %1320 = vmatpush1.bf16.msra.mxu1 %v2547_v49  ;;  %v2642_v49 = vld [vmem:[#allocation5 + $0x14c] ss:$16 sps:$4 sm:$0xff]  }
  0x67   :  { %1361 = vmatpush1.bf16.msra.mxu0 %v2548_v50  ;;  %1321 = vmatprep.subr.bf16.mxu1 %v2549_v52  ;;  %v2637_v50 = vld [vmem:[#allocation5 + $0x540] ss:$16 sps:$4 sm:$0xff]   ;;  %v2640_v52 = vld [vmem:[#allocation5 + $0x148] ss:$16 sps:$4 sm:$0xff]  }
  0x68   :  { %1362 = vmatprep.subr.bf16.mxu0 %v2551_v53  ;;  %v2645_v53 = vld [vmem:[#allocation5 + $0x564] ss:$16 sps:$4 sm:$0xff]  }
  0x6a   :  { %1322 = vmatpush1.bf16.msra.mxu1 %v2553_v54  ;;  %v2648_v54 = vld [vmem:[#allocation5 + $0x16c] ss:$16 sps:$4 sm:$0xff]  }
  0x6b   :  { %1363 = vmatpush1.bf16.msra.mxu0 %v2554_v55  ;;  %1323 = vmatprep.subr.bf16.mxu1 %v2555_v56  ;;  %v2643_v55 = vld [vmem:[#allocation5 + $0x560] ss:$16 sps:$4 sm:$0xff]   ;;  %v2646_v56 = vld [vmem:[#allocation5 + $0x168] ss:$16 sps:$4 sm:$0xff]  }
  0x6c   :  { %1364 = vmatprep.subr.bf16.mxu0 %v2557_v57  ;;  %v2651_v57 = vld [vmem:[#allocation5 + $0x584] ss:$16 sps:$4 sm:$0xff]  }
  0x6e   :  { %1324 = vmatpush1.bf16.msra.mxu1 %v2559_v58  ;;  %v2654_v58 = vld [vmem:[#allocation5 + $0x18c] ss:$16 sps:$4 sm:$0xff]  }
  0x6f   :  { %1365 = vmatpush1.bf16.msra.mxu0 %v2560_v59  ;;  %1325 = vmatprep.subr.bf16.mxu1 %v2561_v60  ;;  %v2649_v59 = vld [vmem:[#allocation5 + $0x580] ss:$16 sps:$4 sm:$0xff]   ;;  %v2652_v60 = vld [vmem:[#allocation5 + $0x188] ss:$16 sps:$4 sm:$0xff]  }
  0x70   :  { %1366 = vmatprep.subr.bf16.mxu0 %v2563_v61  ;;  %v2657_v61 = vld [vmem:[#allocation5 + $0x5a4] ss:$16 sps:$4 sm:$0xff]  }
  0x72   :  { %1326 = vmatpush1.bf16.msra.mxu1 %v2565_v62  ;;  %v2660_v62 = vld [vmem:[#allocation5 + $0x1ac] ss:$16 sps:$4 sm:$0xff]  }
  0x73   :  { %1367 = vmatpush1.bf16.msra.mxu0 %v2566_v63  ;;  %1327 = vmatprep.subr.bf16.mxu1 %v2567_v0  ;;  %v2655_v63 = vld [vmem:[#allocation5 + $0x5a0] ss:$16 sps:$4 sm:$0xff]   ;;  %v2658_v0 = vld [vmem:[#allocation5 + $0x1a8] ss:$16 sps:$4 sm:$0xff]  }
  0x74   :  { %1368 = vmatprep.subr.bf16.mxu0 %v2569_v1  ;;  %v2663_v1 = vld [vmem:[#allocation5 + $0x5c4] ss:$16 sps:$4 sm:$0xff]  }
  0x76   :  { %1328 = vmatpush1.bf16.msra.mxu1 %v2571_v2  ;;  %v2666_v2 = vld [vmem:[#allocation5 + $0x1cc] ss:$16 sps:$4 sm:$0xff]  }
  0x77   :  { %1369 = vmatpush1.bf16.msra.mxu0 %v2572_v3  ;;  %1461 = vmatprep.subr.bf16.mxu1 %v2582_v5  ;;  %v2661_v3 = vld [vmem:[#allocation5 + $0x5c0] ss:$16 sps:$4 sm:$0xff]   ;;  %v2669_v5 = vld [vmem:[#allocation5 + $0x5e4] ss:$16 sps:$4 sm:$0xff]  }
  0x78   :  { %1379 = vmatprep.subr.bf16.mxu0 %v2579_v4  ;;  %v2664_v4 = vld [vmem:[#allocation5 + $0x1c8] ss:$16 sps:$4 sm:$0xff]  }
  0x79   :  { %1330 = vmatmul.mubr.bf16.vlgmr.msra.gmra.mrb[0].mxu1 %v3086_v6 }
  0x7a   :  { %1371 = vmatmul.mubr.bf16.vlgmr.msra.gmra.mrb[0].mxu0 %v3088_v7  ;;  %1462 = vmatpush1.bf16.msra.mxu1 %v2580_v9  ;;  %v2667_v9 = vld [vmem:[#allocation5 + $0x5e0] ss:$16 sps:$4 sm:$0xff]  }
  0x7b   :  { %1380 = vmatpush1.bf16.msra.mxu0 %v2577_v8  ;;  %1463 = vmatprep.subr.bf16.mxu1 %v2588_v11  ;;  %v2672_v8 = vld [vmem:[#allocation5 + $0x1ec] ss:$16 sps:$4 sm:$0xff]  }
  0x7c   :  { %1381 = vmatprep.subr.bf16.mxu0 %v2585_v10  ;;  %1493 = vmatprep.mubr.bf16.mxu1 %v3080_v47  ;;  %v2634_v47 = vld [vmem:[#allocation5 + $0x128] ss:$16 sps:$4 sm:$0xff]   ;;  %v2677_v11 = vld [vmem:[#allocation5 + $0x20c] ss:$16 sps:$4 sm:$0xff]  }
  0x7d   :  { %1411 = vmatprep.mubr.bf16.mxu0 %v3097_v34  ;;  %v2670_v10 = vld [vmem:[#allocation5 + $0x1e8] ss:$16 sps:$4 sm:$0xff]  }
  0x7e   :  { %1464 = vmatpush1.bf16.msra.mxu1 %v2586_v13  ;;  %v3102_v13 = vcombine.low %v3093_v32, %v3093_v32  ;;  %v2700_v32 = vld [vmem:[#allocation5 + $0x2e8] ss:$16 sps:$4 sm:$0xff]  }
  0x7f   :  { %1382 = vmatpush1.bf16.msra.mxu0 %v2583_v12  ;;  %1465 = vmatprep.subr.bf16.mxu1 %v2594_v15  ;;  %v2683_v12 = vld [vmem:[#allocation5 + $0x604] ss:$16 sps:$4 sm:$0xff]   ;;  %v2681_v15 = vld [vmem:[#allocation5 + $0x600] ss:$16 sps:$4 sm:$0xff]  }
  0x80   :  { %1383 = vmatprep.subr.bf16.mxu0 %v2591_v14  ;;  %v2675_v14 = vld [vmem:[#allocation5 + $0x208] ss:$16 sps:$4 sm:$0xff]  }
  0x82   :  { %1466 = vmatpush1.bf16.msra.mxu1 %v2592_v17  ;;  %v2678_v17 = vld [vmem:[#allocation5 + $0x228] ss:$16 sps:$4 sm:$0xff]  }
  0x83   :  { %1384 = vmatpush1.bf16.msra.mxu0 %v2589_v16  ;;  %1467 = vmatprep.subr.bf16.mxu1 %v2600_v19  ;;  %v2680_v16 = vld [vmem:[#allocation5 + $0x22c] ss:$16 sps:$4 sm:$0xff]   ;;  %v3001_v19 = vmov 0  }
  0x84   :  { %1385 = vmatprep.subr.bf16.mxu0 %v2597_v18  ;;  %v2686_v18 = vld [vmem:[#allocation5 + $0x24c] ss:$16 sps:$4 sm:$0xff]  }
  0x86   :  { %1468 = vmatpush1.bf16.msra.mxu1 %v2598_v21  ;;  %v2690_v21 = vld [vmem:[#allocation5 + $0x26c] ss:$16 sps:$4 sm:$0xff]  }
  0x87   :  { %1386 = vmatpush1.bf16.msra.mxu0 %v2595_v20  ;;  %1469 = vmatprep.subr.bf16.mxu1 %v2606_v23  ;;  %v2684_v20 = vld [vmem:[#allocation5 + $0x248] ss:$16 sps:$4 sm:$0xff]  }
  0x88   :  { %1387 = vmatprep.subr.bf16.mxu0 %v2603_v22  ;;  %v3108_v22 = vld [vmem:[#allocation2 + $0x18] ss:$0 sps:$4 sm:$0xff]   ;;  %v2688_v23 = vld [vmem:[#allocation5 + $0x268] ss:$16 sps:$4 sm:$0xff]  }
  0x8a   :  { %1470 = vmatpush1.bf16.msra.mxu1 %v2604_v25  ;;  %v2696_v25 = vld [vmem:[#allocation5 + $0x2ac] ss:$16 sps:$4 sm:$0xff]  }
  0x8b   :  { %1388 = vmatpush1.bf16.msra.mxu0 %v2601_v24  ;;  %1471 = vmatprep.subr.bf16.mxu1 %v2612_v27  ;;  %v2693_v24 = vld [vmem:[#allocation5 + $0x28c] ss:$16 sps:$4 sm:$0xff]  }
  0x8c   :  { %1389 = vmatprep.subr.bf16.mxu0 %v2609_v26  ;;  %v2694_v26 = vld [vmem:[#allocation5 + $0x2a8] ss:$16 sps:$4 sm:$0xff]   ;;  %v2699_v27 = vld [vmem:[#allocation5 + $0x2cc] ss:$16 sps:$4 sm:$0xff]  }
  0x8e   :  { %1472 = vmatpush1.bf16.msra.mxu1 %v2610_v29  ;;  %v2778_v29 = vld [vmem:[#allocation7] ss:$8 sps:$4 sm:$0xff]  }
  0x8f   :  { %1390 = vmatpush1.bf16.msra.mxu0 %v2607_v28  ;;  %1473 = vmatprep.subr.bf16.mxu1 %v2618_v31  ;;  %v2702_v28 = vld [vmem:[#allocation5 + $0x2ec] ss:$16 sps:$4 sm:$0xff]  }
  0x90   :  { %1391 = vmatprep.subr.bf16.mxu0 %v2615_v30  ;;  %v2780_v30 = vld [vmem:[#allocation7 + $0x4] ss:$8 sps:$4 sm:$0xff]   ;;  %v2783_v31 = vld [vmem:[#allocation7 + $0x14] ss:$8 sps:$4 sm:$0xff]  }
  0x92   :  { %1474 = vmatpush1.bf16.msra.mxu1 %v2616_v35  ;;  %v2705_v35 = vld [vmem:[#allocation5 + $0x30c] ss:$16 sps:$4 sm:$0xff]  }
  0x93   :  { %1392 = vmatpush1.bf16.msra.mxu0 %v2613_v33  ;;  %1475 = vmatprep.subr.bf16.mxu1 %v2624_v37  ;;  %v2781_v33 = vld [vmem:[#allocation7 + $0x10] ss:$8 sps:$4 sm:$0xff]  }
  0x94   :  { %1393 = vmatprep.subr.bf16.mxu0 %v2621_v36  ;;  %v2786_v36 = vld [vmem:[#allocation7 + $0x24] ss:$8 sps:$4 sm:$0xff]   ;;  %v2703_v37 = vld [vmem:[#allocation5 + $0x308] ss:$16 sps:$4 sm:$0xff]  }
  0x96   :  { %1476 = vmatpush1.bf16.msra.mxu1 %v2622_v39  ;;  %v2708_v39 = vld [vmem:[#allocation5 + $0x32c] ss:$16 sps:$4 sm:$0xff]  }
  0x97   :  { %1394 = vmatpush1.bf16.msra.mxu0 %v2619_v38  ;;  %1477 = vmatprep.subr.bf16.mxu1 %v2630_v41  ;;  %v2784_v38 = vld [vmem:[#allocation7 + $0x20] ss:$8 sps:$4 sm:$0xff]  }
  0x98   :  { %1395 = vmatprep.subr.bf16.mxu0 %v2627_v40  ;;  %v2789_v40 = vld [vmem:[#allocation7 + $0x34] ss:$8 sps:$4 sm:$0xff]   ;;  %v2706_v41 = vld [vmem:[#allocation5 + $0x328] ss:$16 sps:$4 sm:$0xff]  }
  0x9a   :  { %1478 = vmatpush1.bf16.msra.mxu1 %v2628_v43  ;;  %v2711_v43 = vld [vmem:[#allocation5 + $0x34c] ss:$16 sps:$4 sm:$0xff]  }
  0x9b   :  { %1396 = vmatpush1.bf16.msra.mxu0 %v2625_v42  ;;  %1479 = vmatprep.subr.bf16.mxu1 %v2636_v45  ;;  %v2787_v42 = vld [vmem:[#allocation7 + $0x30] ss:$8 sps:$4 sm:$0xff]  }
  0x9c   :  { %1397 = vmatprep.subr.bf16.mxu0 %v2633_v44  ;;  %v2792_v44 = vld [vmem:[#allocation7 + $0x44] ss:$8 sps:$4 sm:$0xff]   ;;  %v2709_v45 = vld [vmem:[#allocation5 + $0x348] ss:$16 sps:$4 sm:$0xff]  }
  0x9e   :  { %1480 = vmatpush1.bf16.msra.mxu1 %v2634_v47  ;;  %v2714_v47 = vld [vmem:[#allocation5 + $0x36c] ss:$16 sps:$4 sm:$0xff]  }
  0x9f   :  { %1398 = vmatpush1.bf16.msra.mxu0 %v2631_v46  ;;  %1481 = vmatprep.subr.bf16.mxu1 %v2642_v49  ;;  %v2790_v46 = vld [vmem:[#allocation7 + $0x40] ss:$8 sps:$4 sm:$0xff]  }
  0xa0   :  { %1399 = vmatprep.subr.bf16.mxu0 %v2639_v48  ;;  %v2795_v48 = vld [vmem:[#allocation7 + $0x54] ss:$8 sps:$4 sm:$0xff]   ;;  %v2712_v49 = vld [vmem:[#allocation5 + $0x368] ss:$16 sps:$4 sm:$0xff]  }
  0xa2   :  { %1482 = vmatpush1.bf16.msra.mxu1 %v2640_v52  ;;  %v2717_v52 = vld [vmem:[#allocation5 + $0x38c] ss:$16 sps:$4 sm:$0xff]  }
  0xa3   :  { %1400 = vmatpush1.bf16.msra.mxu0 %v2637_v50  ;;  %1483 = vmatprep.subr.bf16.mxu1 %v2648_v54  ;;  %v2793_v50 = vld [vmem:[#allocation7 + $0x50] ss:$8 sps:$4 sm:$0xff]  }
  0xa4   :  { %1401 = vmatprep.subr.bf16.mxu0 %v2645_v53  ;;  %v2798_v53 = vld [vmem:[#allocation7 + $0x64] ss:$8 sps:$4 sm:$0xff]   ;;  %v2715_v54 = vld [vmem:[#allocation5 + $0x388] ss:$16 sps:$4 sm:$0xff]  }
  0xa6   :  { %1484 = vmatpush1.bf16.msra.mxu1 %v2646_v56  ;;  %v2720_v56 = vld [vmem:[#allocation5 + $0x3ac] ss:$16 sps:$4 sm:$0xff]  }
  0xa7   :  { %1402 = vmatpush1.bf16.msra.mxu0 %v2643_v55  ;;  %1485 = vmatprep.subr.bf16.mxu1 %v2654_v58  ;;  %v2796_v55 = vld [vmem:[#allocation7 + $0x60] ss:$8 sps:$4 sm:$0xff]  }
  0xa8   :  { %1403 = vmatprep.subr.bf16.mxu0 %v2651_v57  ;;  %v2801_v57 = vld [vmem:[#allocation7 + $0x74] ss:$8 sps:$4 sm:$0xff]   ;;  %v2718_v58 = vld [vmem:[#allocation5 + $0x3a8] ss:$16 sps:$4 sm:$0xff]  }
  0xaa   :  { %1486 = vmatpush1.bf16.msra.mxu1 %v2652_v60  ;;  %v2723_v60 = vld [vmem:[#allocation5 + $0x3cc] ss:$16 sps:$4 sm:$0xff]  }
  0xab   :  { %1404 = vmatpush1.bf16.msra.mxu0 %v2649_v59  ;;  %1487 = vmatprep.subr.bf16.mxu1 %v2660_v62  ;;  %v2799_v59 = vld [vmem:[#allocation7 + $0x70] ss:$8 sps:$4 sm:$0xff]  }
  0xac   :  { %1405 = vmatprep.subr.bf16.mxu0 %v2657_v61  ;;  %v2804_v61 = vld [vmem:[#allocation7 + $0x84] ss:$8 sps:$4 sm:$0xff]   ;;  %v2721_v62 = vld [vmem:[#allocation5 + $0x3c8] ss:$16 sps:$4 sm:$0xff]  }
  0xae   :  { %1488 = vmatpush1.bf16.msra.mxu1 %v2658_v0  ;;  %v2726_v0 = vld [vmem:[#allocation5 + $0x3ec] ss:$16 sps:$4 sm:$0xff]  }
  0xaf   :  { %1406 = vmatpush1.bf16.msra.mxu0 %v2655_v63  ;;  %1489 = vmatprep.subr.bf16.mxu1 %v2666_v2  ;;  %v2802_v63 = vld [vmem:[#allocation7 + $0x80] ss:$8 sps:$4 sm:$0xff]  }
  0xb0   :  { %1407 = vmatprep.subr.bf16.mxu0 %v2663_v1  ;;  %v2807_v1 = vld [vmem:[#allocation7 + $0x94] ss:$8 sps:$4 sm:$0xff]   ;;  %v2724_v2 = vld [vmem:[#allocation5 + $0x3e8] ss:$16 sps:$4 sm:$0xff]  }
  0xb2   :  { %1490 = vmatpush1.bf16.msra.mxu1 %v2664_v4  ;;  %v2729_v4 = vld [vmem:[#allocation5 + $0x40c] ss:$16 sps:$4 sm:$0xff]  }
  0xb3   :  { %1408 = vmatpush1.bf16.msra.mxu0 %v2661_v3  ;;  %1491 = vmatprep.subr.bf16.mxu1 %v2672_v8  ;;  %v2805_v3 = vld [vmem:[#allocation7 + $0x90] ss:$8 sps:$4 sm:$0xff]  }
  0xb4   :  { %1409 = vmatprep.subr.bf16.mxu0 %v2669_v5  ;;  %v2810_v5 = vld [vmem:[#allocation7 + $0xa4] ss:$8 sps:$4 sm:$0xff]   ;;  %v2727_v8 = vld [vmem:[#allocation5 + $0x408] ss:$16 sps:$4 sm:$0xff]  }
  0xb6   :  { %1492 = vmatpush1.bf16.msra.mxu1 %v2670_v10  ;;  %v2808_v10 = vld [vmem:[#allocation7 + $0xa0] ss:$8 sps:$4 sm:$0xff]  }
  0xb7   :  { %1410 = vmatpush1.bf16.msra.mxu0 %v2667_v9  ;;  %1502 = vmatprep.subr.bf16.mxu1 %v2677_v11  ;;  %v2732_v9 = vld [vmem:[#allocation5 + $0x42c] ss:$16 sps:$4 sm:$0xff]  }
  0xb8   :  { %1420 = vmatprep.subr.bf16.mxu0 %v2683_v12  ;;  %v2813_v11 = vld [vmem:[#allocation7 + $0xb4] ss:$8 sps:$4 sm:$0xff]   ;;  %v2730_v12 = vld [vmem:[#allocation5 + $0x428] ss:$16 sps:$4 sm:$0xff]  }
  0xb9   :  { %1494 = vmatmul.mubr.bf16.vlgmr.msra.gmra.mrb[4].mxu1 %v3086_v6  ;;  %v2691_v6 = vld [vmem:[#allocation5 + $0x288] ss:$16 sps:$4 sm:$0xff]  }
  0xba   :  { %1412 = vmatmul.mubr.bf16.vlgmr.msra.gmra.mrb[0].mxu0 %v3102_v13  ;;  %1503 = vmatpush1.bf16.msra.mxu1 %v2675_v14  ;;  %v2735_v14 = vld [vmem:[#allocation5 + $0x44c] ss:$16 sps:$4 sm:$0xff]  }
  0xbb   :  { %1421 = vmatpush1.bf16.msra.mxu0 %v2681_v15  ;;  %1504 = vmatprep.subr.bf16.mxu1 %v2680_v16  ;;  %v2811_v15 = vld [vmem:[#allocation7 + $0xb0] ss:$8 sps:$4 sm:$0xff]   ;;  %v2816_v16 = vld [vmem:[#allocation7 + $0xc4] ss:$8 sps:$4 sm:$0xff]  }
  0xbc   :  { %1452 = vmatprep.mubr.bf16.mxu0 %v3001_v19  ;;  %1534 = vmatprep.mubr.bf16.mxu1 %v3082_v51  ;;  %v2697_v51 = vld [vmem:[#allocation5 + $0x2c8] ss:$16 sps:$4 sm:$0xff]  }
  0xbd   :  { %2029 = vmatprep.subr.bf16.mxu0 %v2780_v30  ;;  %v2751_v30 = vld [vmem:[#allocation5 + $0x508] ss:$16 sps:$4 sm:$0xff]  }
  0xbe   :  { %1505 = vmatpush1.bf16.msra.mxu1 %v2678_v17  ;;  %v2733_v17 = vld [vmem:[#allocation5 + $0x448] ss:$16 sps:$4 sm:$0xff]  }
  0xbf   :  { %1506 = vmatprep.subr.bf16.mxu1 %v2686_v18  ;;  %v2738_v18 = vld [vmem:[#allocation5 + $0x46c] ss:$16 sps:$4 sm:$0xff]  }
  0xc2   :  { %1507 = vmatpush1.bf16.msra.mxu1 %v2684_v20  ;;  %v2814_v20 = vld [vmem:[#allocation7 + $0xc0] ss:$8 sps:$4 sm:$0xff]  }
  0xc3   :  { %1508 = vmatprep.subr.bf16.mxu1 %v2690_v21  ;;  %v2819_v21 = vld [vmem:[#allocation7 + $0xd4] ss:$8 sps:$4 sm:$0xff]  }
  0xc6   :  { %2368 = vmatmul.mubr.msk.bf16.vlgmr.msra.gmra.mrb[0].mxu0 %vm1293_vm0, %v3108_v22  ;;  %1509 = vmatpush1.bf16.msra.mxu1 %v2688_v23  ;;  %v2741_v23 = vld [vmem:[#allocation5 + $0x48c] ss:$16 sps:$4 sm:$0xff]  }
  0xc7   :  { %1510 = vmatprep.subr.bf16.mxu1 %v2693_v24  ;;  %2030 = vmatpush1.bf16.msra.mxu0 %v2778_v29  ;;  %v2739_v24 = vld [vmem:[#allocation5 + $0x488] ss:$16 sps:$4 sm:$0xff]   ;;  %v2753_v29 = vld [vmem:[#allocation5 + $0x50c] ss:$16 sps:$4 sm:$0xff]  }
  0xc8   :  { %2031 = vmatprep.subr.bf16.mxu0 %v2783_v31  ;;  %v2756_v31 = vld [vmem:[#allocation5 + $0x52c] ss:$16 sps:$4 sm:$0xff]  }
  0xca   :  { %1511 = vmatpush1.bf16.msra.mxu1 %v2691_v6  ;;  %v2744_v6 = vld [vmem:[#allocation5 + $0x4ac] ss:$16 sps:$4 sm:$0xff]  }
  0xcb   :  { %1512 = vmatprep.subr.bf16.mxu1 %v2696_v25  ;;  %2032 = vmatpush1.bf16.msra.mxu0 %v2781_v33  ;;  %v2742_v25 = vld [vmem:[#allocation5 + $0x4a8] ss:$16 sps:$4 sm:$0xff]  }
  0xcc   :  { %2033 = vmatprep.subr.bf16.mxu0 %v2786_v36  ;;  %v2820_v33 = vld [vmem:[#allocation7 + $0xe0] ss:$8 sps:$4 sm:$0xff]   ;;  %v2759_v36 = vld [vmem:[#allocation5 + $0x54c] ss:$16 sps:$4 sm:$0xff]  }
  0xce   :  { %1513 = vmatpush1.bf16.msra.mxu1 %v2694_v26  ;;  %v2747_v26 = vld [vmem:[#allocation5 + $0x4cc] ss:$16 sps:$4 sm:$0xff]  }
  0xcf   :  { %1514 = vmatprep.subr.bf16.mxu1 %v2699_v27  ;;  %2034 = vmatpush1.bf16.msra.mxu0 %v2784_v38  ;;  %v2745_v27 = vld [vmem:[#allocation5 + $0x4c8] ss:$16 sps:$4 sm:$0xff]  }
  0xd0   :  { %2035 = vmatprep.subr.bf16.mxu0 %v2789_v40  ;;  %v2823_v38 = vld [vmem:[#allocation7 + $0xf0] ss:$8 sps:$4 sm:$0xff]   ;;  %v2762_v40 = vld [vmem:[#allocation5 + $0x56c] ss:$16 sps:$4 sm:$0xff]  }
  0xd2   :  { %1515 = vmatpush1.bf16.msra.mxu1 %v2697_v51  ;;  %v2750_v51 = vld [vmem:[#allocation5 + $0x4ec] ss:$16 sps:$4 sm:$0xff]  }
  0xd3   :  { %1516 = vmatprep.subr.bf16.mxu1 %v2702_v28  ;;  %2036 = vmatpush1.bf16.msra.mxu0 %v2787_v42  ;;  %v2748_v28 = vld [vmem:[#allocation5 + $0x4e8] ss:$16 sps:$4 sm:$0xff]  }
  0xd4   :  { %2037 = vmatprep.subr.bf16.mxu0 %v2792_v44  ;;  %v2760_v42 = vld [vmem:[#allocation5 + $0x568] ss:$16 sps:$4 sm:$0xff]  }
  0xd5   :  { %v2763_v44 = vld [vmem:[#allocation5 + $0x588] ss:$16 sps:$4 sm:$0xff]  }
  0xd6   :  { %1517 = vmatpush1.bf16.msra.mxu1 %v2700_v32  ;;  %v2822_v32 = vld [vmem:[#allocation7 + $0xe4] ss:$8 sps:$4 sm:$0xff]  }
  0xd7   :  { %1518 = vmatprep.subr.bf16.mxu1 %v2705_v35  ;;  %2038 = vmatpush1.bf16.msra.mxu0 %v2790_v46  ;;  %v2754_v35 = vld [vmem:[#allocation5 + $0x528] ss:$16 sps:$4 sm:$0xff]  }
  0xd8   :  { %2039 = vmatprep.subr.bf16.mxu0 %v2795_v48  ;;  %v2766_v46 = vld [vmem:[#allocation5 + $0x5a8] ss:$16 sps:$4 sm:$0xff]  }
  0xd9   :  { %v2769_v48 = vld [vmem:[#allocation5 + $0x5c8] ss:$16 sps:$4 sm:$0xff]  }
  0xda   :  { %1519 = vmatpush1.bf16.msra.mxu1 %v2703_v37  ;;  %v2825_v37 = vld [vmem:[#allocation7 + $0xf4] ss:$8 sps:$4 sm:$0xff]  }
  0xdb   :  { %1520 = vmatprep.subr.bf16.mxu1 %v2708_v39  ;;  %2040 = vmatpush1.bf16.msra.mxu0 %v2793_v50  ;;  %v2757_v39 = vld [vmem:[#allocation5 + $0x548] ss:$16 sps:$4 sm:$0xff]  }
  0xdc   :  { %2041 = vmatprep.subr.bf16.mxu0 %v2798_v53  ;;  %v2772_v50 = vld [vmem:[#allocation5 + $0x5e8] ss:$16 sps:$4 sm:$0xff]  }
  0xdd   :  { %v2775_v53 = vld [vmem:[#allocation5 + $0x608] ss:$16 sps:$4 sm:$0xff]  }
  0xde   :  { %1521 = vmatpush1.bf16.msra.mxu1 %v2706_v41  ;;  %v2828_v41 = vld [vmem:[#allocation7 + $0x104] ss:$8 sps:$4 sm:$0xff]  }
  0xdf   :  { %1522 = vmatprep.subr.bf16.mxu1 %v2711_v43  ;;  %2042 = vmatpush1.bf16.msra.mxu0 %v2796_v55  ;;  %v2765_v43 = vld [vmem:[#allocation5 + $0x58c] ss:$16 sps:$4 sm:$0xff]  }
  0xe0   :  { %2043 = vmatprep.subr.bf16.mxu0 %v2801_v57 }
  0xe2   :  { %1523 = vmatpush1.bf16.msra.mxu1 %v2709_v45  ;;  %v2768_v45 = vld [vmem:[#allocation5 + $0x5ac] ss:$16 sps:$4 sm:$0xff]  }
  0xe3   :  { %1524 = vmatprep.subr.bf16.mxu1 %v2714_v47  ;;  %2044 = vmatpush1.bf16.msra.mxu0 %v2799_v59  ;;  %v2771_v47 = vld [vmem:[#allocation5 + $0x5cc] ss:$16 sps:$4 sm:$0xff]  }
  0xe4   :  { %2045 = vmatprep.subr.bf16.mxu0 %v2804_v61 }
  0xe6   :  { %1525 = vmatpush1.bf16.msra.mxu1 %v2712_v49  ;;  %v2774_v49 = vld [vmem:[#allocation5 + $0x5ec] ss:$16 sps:$4 sm:$0xff]  }
  0xe7   :  { %1526 = vmatprep.subr.bf16.mxu1 %v2717_v52  ;;  %2046 = vmatpush1.bf16.msra.mxu0 %v2802_v63  ;;  %v2777_v52 = vld [vmem:[#allocation5 + $0x60c] ss:$16 sps:$4 sm:$0xff]  }
  0xe8   :  { %2047 = vmatprep.subr.bf16.mxu0 %v2807_v1 }
  0xea   :  { %1527 = vmatpush1.bf16.msra.mxu1 %v2715_v54 }
  0xeb   :  { %1528 = vmatprep.subr.bf16.mxu1 %v2720_v56  ;;  %2048 = vmatpush1.bf16.msra.mxu0 %v2805_v3 }
  0xec   :  { %2049 = vmatprep.subr.bf16.mxu0 %v2810_v5 }
  0xee   :  { %1529 = vmatpush1.bf16.msra.mxu1 %v2718_v58  ;;  %v269_v58 = vlaneseq }
  0xef   :  { %1530 = vmatprep.subr.bf16.mxu1 %v2723_v60  ;;  %2050 = vmatpush1.bf16.msra.mxu0 %v2808_v10 }
  0xf0   :  { %2051 = vmatprep.subr.bf16.mxu0 %v2813_v11  ;;  %v3119_v59 = vshrl.u32 %v269_v58, 7  ;;  %v2826_v11 = vld [vmem:[#allocation7 + $0x100] ss:$8 sps:$4 sm:$0xff]  }
  0xf2   :  { %1531 = vmatpush1.bf16.msra.mxu1 %v2721_v62  ;;  %v271_v60 = vsub.s32 0, %v3119_v59  ;;  %vm2130_vm2 = vcmp.lt.s32.totalorder %v3119_v59, 2 }
  0xf3   :  { %1532 = vmatprep.subr.bf16.mxu1 %v2726_v0  ;;  %2052 = vmatpush1.bf16.msra.mxu0 %v2811_v15  ;;  %v2829_v15 = vld [vmem:[#allocation7 + $0x110] ss:$8 sps:$4 sm:$0xff]  }
  0xf4   :  { %2053 = vmatprep.subr.bf16.mxu0 %v2816_v16  ;;  %v2834_v16 = vld [vmem:[#allocation7 + $0x124] ss:$8 sps:$4 sm:$0xff]  }
  0xf6   :  { %1533 = vmatpush1.bf16.msra.mxu1 %v2724_v2 }
  0xf7   :  { %1543 = vmatprep.subr.bf16.mxu1 %v2729_v4  ;;  %2054 = vmatpush1.bf16.msra.mxu0 %v2814_v20  ;;  %v2835_v20 = vld [vmem:[#allocation7 + $0x130] ss:$8 sps:$4 sm:$0xff]  }
  0xf8   :  { %2055 = vmatprep.subr.bf16.mxu0 %v2819_v21  ;;  %v2840_v21 = vld [vmem:[#allocation7 + $0x144] ss:$8 sps:$4 sm:$0xff]  }
  0xf9   :  { %1535 = vmatmul.mubr.bf16.vlgmr.msra.gmra.mrb[4].mxu1 %v3088_v7  ;;  %v2736_v7 = vld [vmem:[#allocation5 + $0x468] ss:$16 sps:$4 sm:$0xff]  }
  0xfa   :  { %1544 = vmatpush1.bf16.msra.mxu1 %v2727_v8  ;;  %1575 = vmatprep.mubr.bf16.mxu1 %v3097_v34  ;;  %v2817_v34 = vld [vmem:[#allocation7 + $0xd0] ss:$8 sps:$4 sm:$0xff]  }
  0xfb   :  { %1545 = vmatprep.subr.bf16.mxu1 %v2732_v9  ;;  %2056 = vmatpush1.bf16.msra.mxu0 %v2817_v34  ;;  %v2841_v34 = vld [vmem:[#allocation7 + $0x150] ss:$8 sps:$4 sm:$0xff]  }
  0xfc   :  { %2057 = vmatprep.subr.bf16.mxu0 %v2822_v32  ;;  %v2861_v32 = vld [vmem:[#allocation7 + $0x1b4] ss:$8 sps:$4 sm:$0xff]  }
  0xfe   :  { %1546 = vmatpush1.bf16.msra.mxu1 %v2730_v12 }
  0xff   :  { %1547 = vmatprep.subr.bf16.mxu1 %v2735_v14  ;;  %2058 = vmatpush1.bf16.msra.mxu0 %v2820_v33  ;;  %v2831_v14 = vld [vmem:[#allocation7 + $0x114] ss:$8 sps:$4 sm:$0xff]   ;;  %v2859_v33 = vld [vmem:[#allocation7 + $0x1b0] ss:$8 sps:$4 sm:$0xff]  }
 0x100   :  { %2059 = vmatprep.subr.bf16.mxu0 %v2825_v37  ;;  %v2867_v37 = vld [vmem:[#allocation7 + $0x1d4] ss:$8 sps:$4 sm:$0xff]  }
 0x102   :  { %1548 = vmatpush1.bf16.msra.mxu1 %v2733_v17  ;;  %v2832_v17 = vld [vmem:[#allocation7 + $0x120] ss:$8 sps:$4 sm:$0xff]  }
 0x103   :  { %1549 = vmatprep.subr.bf16.mxu1 %v2738_v18  ;;  %2060 = vmatpush1.bf16.msra.mxu0 %v2823_v38  ;;  %v2837_v18 = vld [vmem:[#allocation7 + $0x134] ss:$8 sps:$4 sm:$0xff]   ;;  %v2865_v38 = vld [vmem:[#allocation7 + $0x1d0] ss:$8 sps:$4 sm:$0xff]  }
 0x104   :  { %2070 = vmatprep.subr.bf16.mxu0 %v2828_v41  ;;  %v2873_v41 = vld [vmem:[#allocation7 + $0x1f4] ss:$8 sps:$4 sm:$0xff]  }
 0x106   :  { %1550 = vmatpush1.bf16.msra.mxu1 %v2736_v7  ;;  %v2838_v7 = vld [vmem:[#allocation7 + $0x140] ss:$8 sps:$4 sm:$0xff]  }
 0x107   :  { %1551 = vmatprep.subr.bf16.mxu1 %v2741_v23  ;;  %v2843_v23 = vld [vmem:[#allocation7 + $0x154] ss:$8 sps:$4 sm:$0xff]  }
 0x10a   :  { %1552 = vmatpush1.bf16.msra.mxu1 %v2739_v24  ;;  %v2846_v24 = vld [vmem:[#allocation7 + $0x164] ss:$8 sps:$4 sm:$0xff]  }
 0x10b   :  { %1553 = vmatprep.subr.bf16.mxu1 %v2744_v6  ;;  %v2844_v6 = vld [vmem:[#allocation7 + $0x160] ss:$8 sps:$4 sm:$0xff]  }
 0x10e   :  { %1554 = vmatpush1.bf16.msra.mxu1 %v2742_v25  ;;  %v2849_v25 = vld [vmem:[#allocation7 + $0x174] ss:$8 sps:$4 sm:$0xff]  }
 0x10f   :  { %1555 = vmatprep.subr.bf16.mxu1 %v2747_v26  ;;  %v2847_v26 = vld [vmem:[#allocation7 + $0x170] ss:$8 sps:$4 sm:$0xff]  }
 0x112   :  { %1556 = vmatpush1.bf16.msra.mxu1 %v2745_v27  ;;  %v2852_v27 = vld [vmem:[#allocation7 + $0x184] ss:$8 sps:$4 sm:$0xff]  }
 0x113   :  { %1557 = vmatprep.subr.bf16.mxu1 %v2750_v51  ;;  %v2850_v51 = vld [vmem:[#allocation7 + $0x180] ss:$8 sps:$4 sm:$0xff]  }
 0x116   :  { %1558 = vmatpush1.bf16.msra.mxu1 %v2748_v28  ;;  %v2855_v28 = vld [vmem:[#allocation7 + $0x194] ss:$8 sps:$4 sm:$0xff]  }
 0x117   :  { %1559 = vmatprep.subr.bf16.mxu1 %v2753_v29  ;;  %v2853_v29 = vld [vmem:[#allocation7 + $0x190] ss:$8 sps:$4 sm:$0xff]  }
 0x11a   :  { %1560 = vmatpush1.bf16.msra.mxu1 %v2751_v30  ;;  %v2858_v30 = vld [vmem:[#allocation7 + $0x1a4] ss:$8 sps:$4 sm:$0xff]  }
 0x11b   :  { %1561 = vmatprep.subr.bf16.mxu1 %v2756_v31  ;;  %v2856_v31 = vld [vmem:[#allocation7 + $0x1a0] ss:$8 sps:$4 sm:$0xff]  }
 0x11e   :  { %1562 = vmatpush1.bf16.msra.mxu1 %v2754_v35  ;;  %v2864_v35 = vld [vmem:[#allocation7 + $0x1c4] ss:$8 sps:$4 sm:$0xff]  }
 0x11f   :  { %1563 = vmatprep.subr.bf16.mxu1 %v2759_v36  ;;  %v2862_v36 = vld [vmem:[#allocation7 + $0x1c0] ss:$8 sps:$4 sm:$0xff]  }
 0x122   :  { %1564 = vmatpush1.bf16.msra.mxu1 %v2757_v39  ;;  %v2870_v39 = vld [vmem:[#allocation7 + $0x1e4] ss:$8 sps:$4 sm:$0xff]  }
 0x123   :  { %1565 = vmatprep.subr.bf16.mxu1 %v2762_v40  ;;  %v2868_v40 = vld [vmem:[#allocation7 + $0x1e0] ss:$8 sps:$4 sm:$0xff]  }
 0x126   :  { %1566 = vmatpush1.bf16.msra.mxu1 %v2760_v42  ;;  %v2871_v42 = vld [vmem:[#allocation7 + $0x1f0] ss:$8 sps:$4 sm:$0xff]  }
 0x127   :  { %1567 = vmatprep.subr.bf16.mxu1 %v2765_v43  ;;  %v279_v43 = vsub.s32 2, %v3119_v59 }
 0x12a   :  { %1568 = vmatpush1.bf16.msra.mxu1 %v2763_v44  ;;  %v283_v44 = vsub.s32 3, %v3119_v59 }
 0x12b   :  { %1569 = vmatprep.subr.bf16.mxu1 %v2768_v45 }
 0x12e   :  { %1570 = vmatpush1.bf16.msra.mxu1 %v2766_v46 }
 0x12f   :  { %1571 = vmatprep.subr.bf16.mxu1 %v2771_v47 }
 0x132   :  { %1572 = vmatpush1.bf16.msra.mxu1 %v2769_v48 }
 0x133   :  { %1573 = vmatprep.subr.bf16.mxu1 %v2774_v49 }
 0x136   :  { %1574 = vmatpush1.bf16.msra.mxu1 %v2772_v50 }
 0x137   :  { %1584 = vmatprep.subr.bf16.mxu1 %v2777_v52 }
 0x139   :  { %1576 = vmatmul.mubr.bf16.vlgmr.msra.gmra.mrb[4].mxu1 %v3102_v13  ;;  %v3125_v13 = vld [vmem:[%s3179_s2] sm:$0xf] }
 0x13a   :  { %1585 = vmatpush1.bf16.msra.mxu1 %v2775_v53  ;;  %1616 = vmatprep.mubr.bf16.mxu1 %v3001_v19  ;;  %v275_v19 = vsub.s32 1, %v3119_v59  ;;  %v280_v45 = vrot.slane %v3125_v13, %v279_v43  ;;  %v284_v46 = vrot.slane %v3125_v13, %v283_v44 }
 0x13c   :  { %v276_v61 = vrot.slane %v3125_v13, %v275_v19 }
 0x145   :  { %2369 = vmatmul.mubr.msk.bf16.vlgmr.msra.gmra.mrb[4].mxu1 %vm1293_vm0, %v3108_v22  ;;  %v272_v22 = vrot.slane %v3125_v13, %v271_v60 }
 0x14c   :  { %v1331_v54 = vpop.f32.mrb[0].mxu1 }
 0x14d   :  { %v1333_v55 = vpop.f32.mrb[1].mxu1  ;;  %v1332_v62 = vadd.f32 %v1331_v54, %v272_v22  ;;  %v1697_v22 = vld [vmem:[%s3181_s4] sm:$0x3]  ;;  %s3002_s4 = smov [#allocation8]  }
 0x14e   :  { %v1335_v56 = vpop.f32.mrb[2].mxu1  ;;  %v1334_v63 = vadd.f32 %v1333_v55, %v276_v61  ;;  %v1706_v61 = vrot.slane %v1697_v22, %v275_v19  ;;  %s2141_s20 = sshll.u32 %s3002_s4, 4  ;;  %s2142_s20 = int_to_ptr.vmem [resolvable:$true] %s2141_s20 }
 0x14f   :  { %v1336_v57 = vpop.f32.mrb[3].mxu1  ;;  %s2942_s23 = scalar_lea.vmem %s2142_s20, 128  ;;  %p2947_p11 = scmp.lt.s32.totalorder %s2142_s20, %s2142_s20 }
 0x150   :  { %p2943_p10 = scmp.ne.s32.totalorder %s2142_s20, %s2942_s23  ;;  %p2948_p12 = scmp.lt.s32.totalorder %s2942_s23, %s2942_s23 }
 0x152   :  { %p2949_p13 = por %p2948_p12, %p2947_p11 }
 0x154   :  { %p2950_p0 = pnand %p2949_p13, %p2943_p10 }
 0x199   :  { %v1454_v0 = vpop.f32.mrb[0].mxu0 }
 0x19a   :  { %v2436_v1 = vadd.f32 %v1454_v0, %v1332_v62  ;;  %v1456_v2 = vpop.f32.mrb[1].mxu0 }
 0x19b   :  { %v2438_v3 = vadd.f32 %v1456_v2, %v1334_v63  ;;  %v1458_v4 = vpop.f32.mrb[2].mxu0 }
 0x19c   :  { %v1625_v5 = vmax.f32 %v2436_v1, 0.0  ;;  %v1459_v8 = vpop.f32.mrb[3].mxu0 }
 0x19d   :  { %v1626_v9 = vmax.f32 %v2438_v3, 0.0  ;;  %v1702_v3 = vrot.slane %v1697_v22, %v271_v60  ;;  %v2123_v8 = vand.u32 127, %v269_v58 }
 0x19e   :  { %v1629_v12 = vpack.c.bf16 %v1625_v5, %v1625_v5  ;;  %v2113_v5 = vld [vmem:[%s3182_s5] sm:$0xff] }
 0x19f   :  { %v1630_v10 = vpack.c.bf16 %v1626_v9, %v1626_v9  ;;  %vm2124_vm1 = vcmp.lt.s32.totalorder %v2123_v8, 32 }
 0x1a1   :  { %2061 = vmatprep.mubr.bf16.mxu0 %v1630_v10 }
 0x1a2   :  { %2062 = vmatmul.mubr.bf16.vlgmr.msra.gmra.mrb[4].mxu0 %v1629_v12 }
 0x1a3   :  { %2071 = vmatpush1.bf16.msra.mxu0 %v2826_v11 }
 0x1a4   :  { %2072 = vmatprep.subr.bf16.mxu0 %v2831_v14 }
 0x1a7   :  { %2073 = vmatpush1.bf16.msra.mxu0 %v2829_v15 }
 0x1a8   :  { %2074 = vmatprep.subr.bf16.mxu0 %v2834_v16 }
 0x1ab   :  { %2075 = vmatpush1.bf16.msra.mxu0 %v2832_v17 }
 0x1ac   :  { %2076 = vmatprep.subr.bf16.mxu0 %v2837_v18 }
 0x1af   :  { %2077 = vmatpush1.bf16.msra.mxu0 %v2835_v20 }
 0x1b0   :  { %2078 = vmatprep.subr.bf16.mxu0 %v2840_v21 }
 0x1b3   :  { %2079 = vmatpush1.bf16.msra.mxu0 %v2838_v7 }
 0x1b4   :  { %2080 = vmatprep.subr.bf16.mxu0 %v2843_v23 }
 0x1b7   :  { %2081 = vmatpush1.bf16.msra.mxu0 %v2841_v34 }
 0x1b8   :  { %2082 = vmatprep.subr.bf16.mxu0 %v2846_v24 }
 0x1bb   :  { %2083 = vmatpush1.bf16.msra.mxu0 %v2844_v6 }
 0x1bc   :  { %2084 = vmatprep.subr.bf16.mxu0 %v2849_v25 }
 0x1bf   :  { %2085 = vmatpush1.bf16.msra.mxu0 %v2847_v26 }
 0x1c0   :  { %2086 = vmatprep.subr.bf16.mxu0 %v2852_v27 }
 0x1c3   :  { %2087 = vmatpush1.bf16.msra.mxu0 %v2850_v51 }
 0x1c4   :  { %2088 = vmatprep.subr.bf16.mxu0 %v2855_v28 }
 0x1c7   :  { %2089 = vmatpush1.bf16.msra.mxu0 %v2853_v29 }
 0x1c8   :  { %2090 = vmatprep.subr.bf16.mxu0 %v2858_v30 }
 0x1cb   :  { %2091 = vmatpush1.bf16.msra.mxu0 %v2856_v31 }
 0x1cc   :  { %2092 = vmatprep.subr.bf16.mxu0 %v2861_v32 }
 0x1cf   :  { %2093 = vmatpush1.bf16.msra.mxu0 %v2859_v33 }
 0x1d0   :  { %2094 = vmatprep.subr.bf16.mxu0 %v2864_v35 }
 0x1d3   :  { %2095 = vmatpush1.bf16.msra.mxu0 %v2862_v36 }
 0x1d4   :  { %2096 = vmatprep.subr.bf16.mxu0 %v2867_v37 }
 0x1d7   :  { %2097 = vmatpush1.bf16.msra.mxu0 %v2865_v38 }
 0x1d8   :  { %2098 = vmatprep.subr.bf16.mxu0 %v2870_v39 }
 0x1db   :  { %2099 = vmatpush1.bf16.msra.mxu0 %v2868_v40 }
 0x1dc   :  { %2100 = vmatprep.subr.bf16.mxu0 %v2873_v41 }
 0x1df   :  { %2101 = vmatpush1.bf16.msra.mxu0 %v2871_v42 }
 0x218   :  { %v1618_v47 = vpop.f32.mrb[4].mxu1 }
 0x219   :  { %v2439_v48 = vadd.f32 %v1618_v47, %v280_v45  ;;  %v1620_v49 = vpop.f32.mrb[5].mxu1 }
 0x21a   :  { %v2440_v50 = vadd.f32 %v1620_v49, %v284_v46  ;;  %v1622_v52 = vpop.f32.mrb[6].mxu1 }
 0x21b   :  { %v1627_v53 = vmax.f32 %v2439_v48, 0.0  ;;  %v1623_v54 = vpop.f32.mrb[7].mxu1 }
 0x21c   :  { %v1628_v55 = vmax.f32 %v2440_v50, 0.0 }
 0x21d   :  { %v1631_v57 = vpack.c.bf16 %v1627_v53, %v1627_v53 }
 0x21e   :  { %v1632_v56 = vpack.c.bf16 %v1628_v55, %v1628_v55 }
 0x220   :  { %2102 = vmatprep.mubr.bf16.mxu0 %v1632_v56 }
 0x221   :  { %2103 = vmatmul.mubr.bf16.vlgmr.msra.gmra.mrb[4].mxu0 %v1631_v57 }
 0x2f4   :  { %v2104_v13 = vpop.f32.mrb[4].mxu0 }
 0x2f5   :  { %v2106_v62 = vpop.f32.mrb[5].mxu0  ;;  %v2441_v4 = vadd.f32 %v2104_v13, %v1702_v3 }
 0x2f6   :  { %v2442_v63 = vadd.f32 %v2106_v62, %v1706_v61  ;;  %v2108_v0 = vpop.f32.mrb[6].mxu0 }
 0x2f7   :  { %v2109_v1 = vpop.f32.mrb[7].mxu0  ;;  %v2118_v19 = vmul.f32 %v2441_v4, %v2441_v4 }
 0x2f8   :  { %v2111_v2 = vmul.f32 1.442695, %v2442_v63 }
 0x2fa   :  { %2874 = vpow2.f32 %v2111_v2 }
 0x304   :  { %v2875_v9 = vpop.eup %2874 }
 0x305   :  { %v2117_v10 = vmul.f32 %v2875_v9, %v2875_v9  ;;  %v2114_v11 = vmul.f32 %v2875_v9, %v2113_v5 }
 0x307   :  { %v2119_v12 = vadd.f32 %v2118_v19, %v2117_v10  ;;  %v2115_v14 = vadd.f32 %v2441_v4, %v2114_v11 }
 0x309   :  { %v2120_v60 = vsub.f32 %v2119_v12, %v2442_v63  ;;  %2116 = vst [vmem:[#allocation8] sm:$0xff] %v2115_v14 }
 0x30a   :  { %2953 = shalt.err (!%p2950_p0)
}
 0x30b   :  { %s2954_s26 = scalar_lea.hbm %s3183_s6, 128 }
 0x30c   :  { %p2955_p1 = scmp.ne.s32.totalorder %s3183_s6, %s2954_s26  ;;  %p2958_p2 = scmp.lt.u32.totalorder %s2954_s26, %s3183_s6 }
 0x30e   :  { %p2960_p3 = pnand %p2958_p2, %p2955_p1 }
 0x310   :  { %2963 = shalt.err (!%p2960_p3)
}
 0x311   :  { %2144 = dma.vmem_to_hbm [thread:$0]  %s2142_s20, 128, %s3183_s6, [#allocation4]   ;;  %vm2131_vm3 = vmand %vm2124_vm1, %vm2130_vm2  ;;  %v2434_v58 = vadd.f32 -0.5, %v2120_v60 }
 0x312   :  { %s2964_s8 = scalar_lea.vmem %s2152_s22, 128  ;;  %p2969_p5 = scmp.lt.s32.totalorder %s2152_s22, %s2152_s22 }
 0x313   :  { %v2132_v15 = vsel %vm2131_vm3, %v2434_v58, 0.0  ;;  %p2965_p4 = scmp.ne.s32.totalorder %s2152_s22, %s2964_s8  ;;  %p2970_p6 = scmp.lt.s32.totalorder %s2964_s8, %s2964_s8 }
 0x314   :  { %2134 = vst [vmem:[#allocation9] sm:$0xff] %v2132_v15 }
 0x315   :  { %p2971_p7 = por %p2970_p6, %p2969_p5 }
 0x317   :  { %p2972_p8 = pnand %p2971_p7, %p2965_p4 }
 0x319   :  { %2975 = shalt.err (!%p2972_p8)
}
 0x31a   :  { %s2976_s11 = scalar_lea.hbm %s3184_s7, 128 }
 0x31b   :  { %p2977_p9 = scmp.ne.s32.totalorder %s3184_s7, %s2976_s11  ;;  %p2980_p10 = scmp.lt.u32.totalorder %s2976_s11, %s3184_s7 }
 0x31d   :  { %p2982_p11 = pnand %p2980_p10, %p2977_p9 }
 0x31f   :  { %2985 = shalt.err (!%p2982_p11)
}
 0x320   :  { %2154 = dma.vmem_to_hbm [thread:$0]  %s2152_s22, 128, %s3184_s7, [#allocation10]  }
 0x321   :  { %2990 = dma.done.wait [#allocation4], 128  }
 0x322   :  { %2991 = vsyncadd [#allocation4], 4294967168 }
 0x323   :  { %2992 = dma.done.wait [#allocation10], 128  }
 0x324   :  { %2993 = vsyncadd [#allocation10], 4294967168 }
 0x325   :  { %2161 = vsyncpa [#allocation3], 1 }
 0x326   :  { %2162 = vsyncpa [#allocation6], 1 }
 0x327   :  { %2163 = vsyncpa [#allocation4], 1 }
 0x328   :  { %2164 = vsyncpa [#allocation10], 1 }

</bundles_post_ra>
